<compile_context>
chip_gen: v5e
topology: v5e:2x2
jax: 0.10.0
libtpu: 0.0.40
codegen_flags: <defaults>
</compile_context>

<pallas_src>
import jax
import jax.numpy as jnp
from jax.experimental import pallas as pl
from jax.experimental.pallas import tpu as pltpu


def ffn_kernel(x_ref, w1_ref, b1_ref, w2_ref, b2_ref, o_ref, acc_ref):
    """One (token-tile, d_ff-tile) step of  relu(fc2(fc1(x)))."""
    k = pl.program_id(1)

    @pl.when(k == 0)
    def _init():
        acc_ref[...] = jnp.zeros_like(acc_ref)

    x = x_ref[...]
    # fc1 partial: (tile_tokens, tile_ff), accumulated in f32 on the MXU.
    h = jnp.dot(x, w1_ref[...], preferred_element_type=jnp.float32) + b1_ref[...]
    # fc2 partial contribution for this d_ff slab, accumulated across k.
    acc_ref[...] += jnp.dot(h.astype(x.dtype), w2_ref[...],
                            preferred_element_type=jnp.float32)

    @pl.when(k == pl.num_programs(1) - 1)
    def _finalize():
        y = acc_ref[...] + b2_ref[...]          # bias2 + ReLU in f32
        o_ref[...] = jnp.maximum(y, 0.0).astype(o_ref.dtype)


def _pick_tile(total, candidates):
    """Largest candidate that evenly divides `total`, else the full extent."""
    for c in candidates:
        if c <= total and total % c == 0:
            return c
    return total


def _vmem_bytes(tile_tokens, tile_ff, d_model, itemsize):
    """Rough VMEM footprint: double-buffered streamed blocks + f32 accumulator."""
    dbl = 2  # Pallas double-buffers every streamed input/output block
    streamed = (2 * tile_tokens * d_model          # x tile + out tile
                + d_model * tile_ff                # W1 k-slab
                + tile_ff * d_model                # W2 k-slab
                + tile_ff + d_model)               # b1 slab, b2
    acc = tile_tokens * d_model * 4                # f32 accumulator scratch
    return dbl * streamed * itemsize + acc


def feed_forward(x_tokens, w1, b1, w2, b2, *, tile_tokens=None, tile_ff=None):
    """x_tokens: (N, d_model); w1: (d_model, d_ff); w2: (d_ff, d_model)."""
    N, d_model = x_tokens.shape
    d_ff = w1.shape[1]
    itemsize = jnp.dtype(x_tokens.dtype).itemsize

    b1 = b1.reshape(1, d_ff)
    b2 = b2.reshape(1, d_model)

    if tile_tokens is None:
        # Many token tiles -> software pipelining + both v7x TensorCores busy.
        # Multiples of 8 (f32 sublane pack); 256 keeps the MXU full on v6e/v7x.
        tile_tokens = _pick_tile(N, (256, 128, 64, 32, 16, 8))
    if tile_ff is None:
        # d_ff reduction tile: multiples of 128 keep W1/W2/b1 blocks on the
        # (8,128) layout grid; shrink until the estimate fits ~44 MiB so the
        # same tiling works on v7x (64 MiB physical VMEM).
        budget = 44 * 2**20
        tile_ff = d_ff
        for cand in (2048, 1024, 512, 256, 128):
            if d_ff % cand == 0:
                tile_ff = cand
                if _vmem_bytes(tile_tokens, cand, d_model, itemsize) <= budget:
                    break
    assert N % tile_tokens == 0 and d_ff % tile_ff == 0

    est = _vmem_bytes(tile_tokens, tile_ff, d_model, itemsize)
    vmem_limit = int(min(max(est + 8 * 2**20, 32 * 2**20), 64 * 2**20))

    grid = (N // tile_tokens, d_ff // tile_ff)

    return pl.pallas_call(
        ffn_kernel,
        out_shape=jax.ShapeDtypeStruct((N, d_model), x_tokens.dtype),
        grid_spec=pltpu.PrefetchScalarGridSpec(
            num_scalar_prefetch=0,
            grid=grid,
            in_specs=[
                # x tile: block index constant across k -> fetched once per i.
                pl.BlockSpec((tile_tokens, d_model), lambda i, k: (i, 0)),
                pl.BlockSpec((d_model, tile_ff), lambda i, k: (0, k)),   # W1 k-slab
                pl.BlockSpec((1, tile_ff), lambda i, k: (0, k)),         # b1 k-slab
                pl.BlockSpec((tile_ff, d_model), lambda i, k: (k, 0)),   # W2 k-slab
                # b2 is constant and tiny (d_model elems); default buffering is fine.
                pl.BlockSpec((1, d_model), lambda i, k: (0, 0)),
            ],
            out_specs=pl.BlockSpec((tile_tokens, d_model), lambda i, k: (i, 0)),
            scratch_shapes=[pltpu.VMEM((tile_tokens, d_model), jnp.float32)],
        ),
        compiler_params=pltpu.CompilerParams(
            dimension_semantics=("parallel", "arbitrary"),
            vmem_limit_bytes=vmem_limit,
        ),
    )(x_tokens, w1, b1, w2, b2)


def feed_forward_module(x, w1, b1, w2, b2, **kw):
    """x: (batch, seq, d_model) -> (batch, seq, d_model), matching nn.Module semantics."""
    B, S, d_model = x.shape
    y = feed_forward(x.reshape(B * S, d_model), w1, b1, w2, b2, **kw)
    return y.reshape(B, S, d_model)


def _reference(x, w1, b1, w2, b2):
    # fc1 -> fc2 -> relu, same order as the PyTorch module.
    return jnp.maximum((x @ w1 + b1.reshape(-1)) @ w2 + b2.reshape(-1), 0.0)


if __name__ == "__main__":
    key = jax.random.PRNGKey(0)

    # --- small test matching the module's toy shapes --------------------------
    d_model, d_ff = 32, 64
    B, S = 2, 8
    k_x, k_w1, k_b1, k_w2, k_b2, key = jax.random.split(key, 6)
    x = jax.random.normal(k_x, (B, S, d_model), dtype=jnp.float32)
    # nn.Linear shapes: fc1.weight (d_ff, d_model), fc2.weight (d_model, d_ff);
    # stored pre-transposed for the kernel.
    w1 = (jax.random.normal(k_w1, (d_ff, d_model), dtype=jnp.float32) * 0.1).T
    b1 = jax.random.normal(k_b1, (d_ff,), dtype=jnp.float32) * 0.1
    w2 = (jax.random.normal(k_w2, (d_model, d_ff), dtype=jnp.float32) * 0.1).T
    b2 = jax.random.normal(k_b2, (d_model,), dtype=jnp.float32) * 0.1

    out = jax.block_until_ready(feed_forward_module(x, w1, b1, w2, b2))
    ref = _reference(x, w1, b1, w2, b2)
    assert out.shape == (B, S, d_model)
    assert jnp.allclose(out, ref, atol=1e-4, rtol=1e-4), "small-shape mismatch"

    # --- tiled test: multiple grid steps on both axes (exercises accumulator) -
    d_model2, d_ff2 = 128, 512
    B2, S2 = 2, 256
    k_x, k_w1, k_b1, k_w2, k_b2, key = jax.random.split(key, 6)
    x2 = jax.random.normal(k_x, (B2, S2, d_model2), dtype=jnp.float32)
    w1_2 = (jax.random.normal(k_w1, (d_ff2, d_model2), dtype=jnp.float32) * 0.05).T
    b1_2 = jax.random.normal(k_b1, (d_ff2,), dtype=jnp.float32) * 0.05
    w2_2 = (jax.random.normal(k_w2, (d_model2, d_ff2), dtype=jnp.float32) * 0.05).T
    b2_2 = jax.random.normal(k_b2, (d_model2,), dtype=jnp.float32) * 0.05

    out2 = jax.block_until_ready(
        feed_forward_module(x2, w1_2, b1_2, w2_2, b2_2,
                            tile_tokens=128, tile_ff=256))  # grid = (4, 2)
    ref2 = _reference(x2, w1_2, b1_2, w2_2, b2_2)
    assert out2.shape == (B2, S2, d_model2)
    assert jnp.allclose(out2, ref2, atol=2e-3, rtol=2e-3), "tiled-shape mismatch"

    print("KERNEL_OK")
</pallas_src>

<mosaic_0001>
module attributes {stable_mosaic.version = 11 : i64} {
  func.func @ffn_kernel(%arg0: i32, %arg1: i32, %arg2: memref<16x32xf32, #tpu.memory_space<vmem>>, %arg3: memref<32x64xf32, #tpu.memory_space<vmem>>, %arg4: memref<1x64xf32, #tpu.memory_space<vmem>>, %arg5: memref<64x32xf32, #tpu.memory_space<vmem>>, %arg6: memref<1x32xf32, #tpu.memory_space<vmem>>, %arg7: memref<16x32xf32, #tpu.memory_space<vmem>>, %arg8: memref<16x32xf32, #tpu.memory_space<vmem>>) attributes {dimension_semantics = [#tpu.dimension_semantics<parallel>, #tpu.dimension_semantics<arbitrary>], iteration_bounds = array<i64: 1, 1>, scalar_prefetch = 0 : i64, scratch_operands = 1 : i64, tpu.core_type = #tpu.core_type<tc>, window_params = [{transform_indices = @transform_0, window_bounds = array<i64: 16, 32>}, {transform_indices = @transform_1, window_bounds = array<i64: 32, 64>}, {transform_indices = @transform_2, window_bounds = array<i64: 1, 64>}, {transform_indices = @transform_3, window_bounds = array<i64: 64, 32>}, {pipeline_mode = #tpu.pipeline_mode<synchronous>, transform_indices = @transform_4, window_bounds = array<i64: 1, 32>}, {transform_indices = @transform_5, window_bounds = array<i64: 16, 32>}]} {
    %c0_i32 = arith.constant 0 : i32
    %0 = arith.cmpi eq, %arg1, %c0_i32 : i32
    %1 = arith.extui %0 : i1 to i32
    %c0_i32_0 = arith.constant 0 : i32
    %2 = arith.cmpi ne, %1, %c0_i32_0 : i32
    scf.if %2 {
      %cst_15 = arith.constant 0.000000e+00 : f32
      %17 = vector.broadcast %cst_15 : f32 to vector<16x32xf32>
      %c0_16 = arith.constant 0 : index
      %c0_17 = arith.constant 0 : index
      %18 = vector.load %arg8[%c0_16, %c0_17] : memref<16x32xf32, #tpu.memory_space<vmem>>, vector<16x32xf32>
      tpu.vector_store %arg8[%c0_16, %c0_17], %17 {strides = array<i32>} : memref<16x32xf32, #tpu.memory_space<vmem>>, vector<16x32xf32>,
    } else {
    }
    %c0 = arith.constant 0 : index
    %c0_1 = arith.constant 0 : index
    %3 = vector.load %arg2[%c0, %c0_1] : memref<16x32xf32, #tpu.memory_space<vmem>>, vector<16x32xf32>
    %c0_2 = arith.constant 0 : index
    %c0_3 = arith.constant 0 : index
    %4 = vector.load %arg3[%c0_2, %c0_3] : memref<32x64xf32, #tpu.memory_space<vmem>>, vector<32x64xf32>
    %cst = arith.constant dense<0.000000e+00> : vector<16x64xf32>
    %5 = tpu.matmul %3, %4, %cst {dimension_numbers = #tpu.dot_dimension_numbers<[1], [0], [0], [1], [0, 0, 1, 1], [], []>} : vector<16x32xf32>, vector<32x64xf32>, vector<16x64xf32> -> vector<16x64xf32>
    %c0_4 = arith.constant 0 : index
    %c0_5 = arith.constant 0 : index
    %6 = vector.load %arg4[%c0_4, %c0_5] : memref<1x64xf32, #tpu.memory_space<vmem>>, vector<1x64xf32>
    %7 = vector.broadcast %6 : vector<1x64xf32> to vector<16x64xf32>
    %8 = arith.addf %5, %7 : vector<16x64xf32>
    %c0_6 = arith.constant 0 : index
    %c0_7 = arith.constant 0 : index
    %9 = vector.load %arg8[%c0_6, %c0_7] : memref<16x32xf32, #tpu.memory_space<vmem>>, vector<16x32xf32>
    %c0_8 = arith.constant 0 : index
    %c0_9 = arith.constant 0 : index
    %10 = vector.load %arg5[%c0_8, %c0_9] : memref<64x32xf32, #tpu.memory_space<vmem>>, vector<64x32xf32>
    %cst_10 = arith.constant dense<0.000000e+00> : vector<16x32xf32>
    %11 = tpu.matmul %8, %10, %cst_10 {dimension_numbers = #tpu.dot_dimension_numbers<[1], [0], [0], [1], [0, 0, 1, 1], [], []>} : vector<16x64xf32>, vector<64x32xf32>, vector<16x32xf32> -> vector<16x32xf32>
    %12 = arith.addf %9, %11 : vector<16x32xf32>
    %c0_11 = arith.constant 0 : index
    %c0_12 = arith.constant 0 : index
    %13 = vector.load %arg8[%c0_11, %c0_12] : memref<16x32xf32, #tpu.memory_space<vmem>>, vector<16x32xf32>
    tpu.vector_store %arg8[%c0_11, %c0_12], %12 {strides = array<i32>} : memref<16x32xf32, #tpu.memory_space<vmem>>, vector<16x32xf32>,
    %c0_i32_13 = arith.constant 0 : i32
    %14 = arith.cmpi eq, %arg1, %c0_i32_13 : i32
    %15 = arith.extui %14 : i1 to i32
    %c0_i32_14 = arith.constant 0 : i32
    %16 = arith.cmpi ne, %15, %c0_i32_14 : i32
    scf.if %16 {
      %c0_15 = arith.constant 0 : index
      %c0_16 = arith.constant 0 : index
      %17 = vector.load %arg8[%c0_15, %c0_16] : memref<16x32xf32, #tpu.memory_space<vmem>>, vector<16x32xf32>
      %c0_17 = arith.constant 0 : index
      %c0_18 = arith.constant 0 : index
      %18 = vector.load %arg6[%c0_17, %c0_18] : memref<1x32xf32, #tpu.memory_space<vmem>>, vector<1x32xf32>
      %19 = vector.broadcast %18 : vector<1x32xf32> to vector<16x32xf32>
      %20 = arith.addf %17, %19 : vector<16x32xf32>
      %cst_19 = arith.constant 0.000000e+00 : f32
      %21 = vector.broadcast %cst_19 : f32 to vector<16x32xf32>
      %22 = arith.maximumf %20, %21 : vector<16x32xf32>
      %c0_20 = arith.constant 0 : index
      %c0_21 = arith.constant 0 : index
      %23 = vector.load %arg7[%c0_20, %c0_21] : memref<16x32xf32, #tpu.memory_space<vmem>>, vector<16x32xf32>
      tpu.vector_store %arg7[%c0_20, %c0_21], %22 {strides = array<i32>} : memref<16x32xf32, #tpu.memory_space<vmem>>, vector<16x32xf32>,
    } else {
    }
    return
  }
  func.func @transform_0(%arg0: i32, %arg1: i32) -> (i32, i32) {
    %c0_i32 = arith.constant 0 : i32
    %c0_i32_0 = arith.constant 0 : i32
    return %arg0, %c0_i32 : i32, i32
  }
  func.func @transform_1(%arg0: i32, %arg1: i32) -> (i32, i32) {
    %c0_i32 = arith.constant 0 : i32
    %c0_i32_0 = arith.constant 0 : i32
    return %c0_i32, %arg1 : i32, i32
  }
  func.func @transform_2(%arg0: i32, %arg1: i32) -> (i32, i32) {
    %c0_i32 = arith.constant 0 : i32
    %c0_i32_0 = arith.constant 0 : i32
    return %c0_i32, %arg1 : i32, i32
  }
  func.func @transform_3(%arg0: i32, %arg1: i32) -> (i32, i32) {
    %c0_i32 = arith.constant 0 : i32
    %c0_i32_0 = arith.constant 0 : i32
    return %arg1, %c0_i32 : i32, i32
  }
  func.func @transform_4(%arg0: i32, %arg1: i32) -> (i32, i32) {
    %c0_i32 = arith.constant 0 : i32
    %c0_i32_0 = arith.constant 0 : i32
    %c0_i32_1 = arith.constant 0 : i32
    return %c0_i32, %c0_i32_0 : i32, i32
  }
  func.func @transform_5(%arg0: i32, %arg1: i32) -> (i32, i32) {
    %c0_i32 = arith.constant 0 : i32
    %c0_i32_0 = arith.constant 0 : i32
    return %arg0, %c0_i32 : i32, i32
  }
}

</mosaic_0001>

<bundles_post_ra>
// kernel: tpu_custom_call.1
= control target key start
LH: loop header
LB: loop body
LE: loop exit
PB: predicated region body
PF: predicated region fallthrough
CT: control target
= control target key end

     0   :  { %s286_s0 = inlined_call_operand.vmem [shape: f32[16,32], index: 0, kind: input, shape index: {}]   ;;  %s287_s1 = inlined_call_operand.vmem [shape: f32[32,64], index: 1, kind: input, shape index: {}]   ;;  %s288_s2 = inlined_call_operand.vmem [shape: f32[1,64], index: 2, kind: input, shape index: {}]   ;;  %s289_s3 = inlined_call_operand.vmem [shape: f32[64,32], index: 3, kind: input, shape index: {}]   ;;  %s290_s4 = inlined_call_operand.vmem [shape: f32[1,32], index: 4, kind: input, shape index: {}]   ;;  %s291_s5 = inlined_call_operand.hbm [shape: f32[16,32], index: 5, kind: output, shape index: {}]  }
   0x1   :  { %v33_v0 = vld [vmem:[%s287_s1 + $0x18] sm:$0xff]  ;;  %v32_v1 = vld [vmem:[%s287_s1 + $0x10] sm:$0xff]  ;;  %v31_v2 = vld [vmem:[%s287_s1 + $0x8] sm:$0xff] }
   0x2   :  { %149 = vmatpush.msra.mxu3 %v33_v0  ;;  %57 = vmatpush.msra.mxu0 %v33_v0  ;;  %v77_v3 = vld [vmem:[%s289_s3 + $0x38] sm:$0xff]  ;;  %v76_v4 = vld [vmem:[%s289_s3 + $0x30] sm:$0xff]  ;;  %v30_v5 = vld [vmem:[%s287_s1] sm:$0xff] }
   0x3   :  { %153 = vmatpush.msra.mxu2 %v77_v3  ;;  %93 = vmatpush.msra.mxu1 %v77_v3 }
   0x4   :  { %150 = vmatpush.msra.mxu3 %v32_v1  ;;  %58 = vmatpush.msra.mxu0 %v32_v1 }
   0x5   :  { %10 = vsyncpa [#allocation4], 0  ;;  %vm25_vm0 = vcmask 261120   ;;  %v29_v6 = vld [vmem:[%s286_s0 + $0x8] sm:$0xff]  ;;  %v28_v7 = vld [vmem:[%s286_s0] sm:$0xff]  ;;  %154 = vmatpush.msra.mxu2 %v76_v4  ;;  %94 = vmatpush.msra.mxu1 %v76_v4  ;;  %v193_v14 = vmov 0.0  }
   0x6   :  { %151 = vmatpush.msra.mxu3 %v31_v2  ;;  %59 = vmatpush.msra.mxu0 %v31_v2  ;;  %v75_v8 = vld [vmem:[%s289_s3 + $0x28] sm:$0xff]  ;;  %v74_v9 = vld [vmem:[%s289_s3 + $0x20] sm:$0xff]  ;;  %v73_v10 = vld [vmem:[%s289_s3 + $0x18] sm:$0xff]  ;;  %26 = vst.msk [vmem:[#allocation2] sm:$0xff] %vm25_vm0, %v193_v14  ;;  %vm78_vm1 = vcmask 523264   ;;  %s133_s25 = sshll.u32 %s291_s5, 4  ;;  %s134_s25 = int_to_ptr.hbm [resolvable:$true] %s133_s25 }
   0x7   :  { %155 = vmatpush.msra.mxu2 %v75_v8  ;;  %95 = vmatpush.msra.mxu1 %v75_v8  ;;  %v72_v11 = vld [vmem:[%s289_s3 + $0x10] sm:$0xff]  ;;  %v71_v12 = vld [vmem:[%s289_s3 + $0x8] sm:$0xff]  ;;  %v70_v13 = vld [vmem:[%s289_s3] sm:$0xff]  ;;  %27 = vst.msk [vmem:[#allocation2 + $0x8] sm:$0xff] %vm25_vm0, %v193_v14  ;;  %s196_s26 = smov 8  }
   0x8   :  { %152 = vmatpush.msra.mxu3 %v30_v5  ;;  %60 = vmatpush.msra.mxu0 %v30_v5  ;;  %v165_v15 = vld [vmem:[%s288_s2] ss:$0 sm:$0xff]  ;;  %s194_s2 = smov [#allocation3]  }
   0x9   :  { %146 = vmatmul.msk.f32.vlgmr.msra.gmra.mxu3 %vm25_vm0, %v29_v6  ;;  %145 = vmatmul.msk.f32.vlgmr.msra.gmra.mxu0 %vm25_vm0, %v28_v7  ;;  %v166_v23 = vld [vmem:[%s290_s4] ss:$0 sm:$0xff]  ;;  %s131_s22 = sshll.u32 %s194_s2, 4  ;;  %s195_s4 = smov 128   ;;  %s132_s22 = int_to_ptr.vmem [resolvable:$true] %s131_s22 }
   0xa   :  { %156 = vmatpush.msra.mxu2 %v74_v9  ;;  %96 = vmatpush.msra.mxu1 %v74_v9 }
   0xc   :  { %157 = vmatpush.msra.mxu2 %v73_v10  ;;  %97 = vmatpush.msra.mxu1 %v73_v10 }
   0xd   :  { %v68_v20 = vld [vmem:[#allocation2] sm:$0xff] }
   0xe   :  { %158 = vmatpush.msra.mxu2 %v72_v11  ;;  %98 = vmatpush.msra.mxu1 %v72_v11  ;;  %v69_v24 = vld [vmem:[#allocation2 + $0x8] sm:$0xff] }
  0x10   :  { %159 = vmatpush.msra.mxu2 %v71_v12  ;;  %99 = vmatpush.msra.mxu1 %v71_v12 }
  0x12   :  { %160 = vmatpush.msra.mxu2 %v70_v13  ;;  %100 = vmatpush.msra.mxu1 %v70_v13 }
  0x86   :  { %v62_v16 = vpop.f32.mrf.mxu0 }
  0x87   :  { %v63_v17 = vadd.f32 %v165_v15, %v62_v16 }
  0x89   :  { %147 = vmatmul.msk.f32.vlgmr.msra.gmra.mxu1 %vm78_vm1, %v63_v17 }
  0x8c   :  { %v65_v18 = vpop.f32.mrf.mxu3 }
  0x8d   :  { %v66_v19 = vadd.f32 %v165_v15, %v65_v18 }
  0x8f   :  { %148 = vmatmul.msk.f32.vlgmr.msra.gmra.mxu2 %vm78_vm1, %v66_v19 }
 0x106   :  { %v102_v21 = vpop.f32.mrf.mxu1 }
 0x107   :  { %v108_v22 = vadd.f32 %v102_v21, %v68_v20 }
 0x109   :  { %110 = vst.msk [vmem:[#allocation2] sm:$0xff] %vm25_vm0, %v108_v22 }
 0x110   :  { %v115_v25 = vld [vmem:[#allocation2] sm:$0xff] }
 0x111   :  { %v121_v26 = vadd.f32 %v166_v23, %v115_v25 }
 0x112   :  { %v105_v27 = vpop.f32.mrf.mxu2 }
 0x113   :  { %v109_v28 = vadd.f32 %v105_v27, %v69_v24  ;;  %v123_v29 = vmax.f32 %v121_v26, 0.0 }
 0x115   :  { %111 = vst.msk [vmem:[#allocation2 + $0x8] sm:$0xff] %vm25_vm0, %v109_v28 }
 0x116   :  { %125 = vst.msk [vmem:[#allocation3] sm:$0xff] %vm25_vm0, %v123_v29 }
 0x11c   :  { %v116_v30 = vld [vmem:[#allocation2 + $0x8] sm:$0xff] }
 0x11d   :  { %v122_v31 = vadd.f32 %v166_v23, %v116_v30 }
 0x11f   :  { %v124_v32 = vmax.f32 %v122_v31, 0.0 }
 0x121   :  { %126 = vst.msk [vmem:[#allocation3 + $0x8] sm:$0xff] %vm25_vm0, %v124_v32 }
 0x122   :  { %139 = dma.vmem_to_hbm [thread:$0]  %s132_s22, 256, %s134_s25, [#allocation4], %s195_s4, %s195_s4, %s196_s26  }
 0x123   :  { %191 = dma.done.wait [#allocation4], 256  }
 0x124   :  { %192 = vsyncadd [#allocation4], 4294967040 }
 0x125   :  { %144 = vsyncpa [#allocation4], 1 }

</bundles_post_ra>
